<compile_context>
chip_gen: v7x
topology: tpu7x:2x2x1
jax: 0.10.0
libtpu: 0.0.40
codegen_flags: <defaults>
</compile_context>

<pallas_src>
import functools

import jax
import jax.numpy as jnp
from jax.experimental import pallas as pl
from jax.experimental.pallas import tpu as pltpu

LN_EPS = 1e-5


def _sage_fused_kernel(a_ref, pp_ref, x_ref, w1_ref, w2_ref, w3_ref, vec_ref, out_ref, *, dout):
    """a_ref:   (Np, Np)        row-normalized mean-aggregation operator (compute dtype)
       pp_ref:  (2, Gp, Np)     stacked [P @ A ; P] pooling operators     (compute dtype)
       x_ref:   (Np, Din_p)     node features                             (compute dtype)
       w1_ref:  (2, Din_p, Dp)  stacked [Wl1 ; Wr1]                       (compute dtype)
       w2_ref:  (2, Dp,   Dp)   stacked [Wl2 ; Wr2]                       (compute dtype)
       w3_ref:  (2, Dp,   Dp)   stacked [Wl3 ; Wr3]                       (f32, feeds LN)
       vec_ref: (8, Dp) f32     rows = [b1, b2, b3, gamma, beta, lane_mask, 0, 0]
       out_ref: (Gp, Dp) f32    lane-dense output slab; sliced to (G, dout) outside."""
    cd = a_ref.dtype
    a = a_ref[...]

    vecs = vec_ref[...]                                   # (8, Dp) f32
    b1, b2, b3 = vecs[0:1, :], vecs[1:2, :], vecs[2:3, :]
    gamma, beta, lane_mask = vecs[3:4, :], vecs[4:5, :], vecs[5:6, :]

    # ---- Layer 1: relu( (A @ x) @ Wl1 + x @ Wr1 + b1 );  Dropout(0.2) is identity (eval).
    x = x_ref[...]
    agg = jnp.dot(a, x, preferred_element_type=jnp.float32).astype(cd)
    h = (jnp.dot(agg, w1_ref[0], preferred_element_type=jnp.float32)
         + jnp.dot(x, w1_ref[1], preferred_element_type=jnp.float32) + b1)
    h = jnp.maximum(h, 0.0).astype(cd)

    # ---- Layer 2: relu( (A @ h) @ Wl2 + h @ Wr2 + b2 );  Dropout identity (eval).
    agg = jnp.dot(a, h, preferred_element_type=jnp.float32).astype(cd)
    h2 = (jnp.dot(agg, w2_ref[0], preferred_element_type=jnp.float32)
          + jnp.dot(h, w2_ref[1], preferred_element_type=jnp.float32) + b2)
    h2 = jnp.maximum(h2, 0.0).astype(cd)

    # ---- Layer 3 + global_mean_pool folded (no ReLU on layer 3, so pooling commutes):
    #   pooled = (P@A @ h2) @ Wl3 + (P @ h2) @ Wr3 + b3      -- kept in f32 end-to-end.
    pa = jnp.dot(pp_ref[0], h2, preferred_element_type=jnp.float32)   # (Gp, Dp) f32
    ph = jnp.dot(pp_ref[1], h2, preferred_element_type=jnp.float32)   # (Gp, Dp) f32
    pooled = (jnp.dot(pa, w3_ref[0], preferred_element_type=jnp.float32)
              + jnp.dot(ph, w3_ref[1], preferred_element_type=jnp.float32) + b3)

    # ---- LayerNorm over the first `dout` (real) lanes.
    # Padded lanes of `pooled` are exactly zero (zero-padded w3/b3), so the mean needs
    # no mask; the precomputed lane mask only protects the variance / output.
    inv_d = 1.0 / float(dout)
    mu = jnp.sum(pooled, axis=-1, keepdims=True) * inv_d
    diff = (pooled - mu) * lane_mask
    var = jnp.sum(diff * diff, axis=-1, keepdims=True) * inv_d
    inv = jax.lax.rsqrt(var + LN_EPS)
    out_ref[...] = diff * inv * gamma + beta


def _default_compute_dtype():
    """v5e has no native bf16 VPU/EUP -> keep activations f32 there; bf16 elsewhere."""
    try:
        kind = jax.devices()[0].device_kind.lower()
    except Exception:  # pragma: no cover - defensive
        kind = ""
    if "v5 lite" in kind or "v5e" in kind or "v5litepod" in kind:
        return jnp.float32
    return jnp.bfloat16


def build_graph_operators(edge_index, batch, num_graphs, num_nodes):
    """Dense mean-aggregation (A), mean-pool (P) and fused (P@A) operators.

    These depend only on the graph structure (edge_index / batch), so build them ONCE
    per static graph batch and reuse across forward calls."""
    src, dst = edge_index[0], edge_index[1]
    a = jnp.zeros((num_nodes, num_nodes), jnp.float32).at[dst, src].add(1.0)
    a = a / jnp.maximum(jnp.sum(a, axis=1, keepdims=True), 1.0)
    p = jax.nn.one_hot(batch, num_graphs, dtype=jnp.float32).T       # (G, N)
    p = p / jnp.maximum(jnp.sum(p, axis=1, keepdims=True), 1.0)
    pa = p @ a                                                        # (G, N)
    return a, p, pa


def pattern_graphsage_forward(x, edge_index, batch, params, num_graphs, *,
                              compute_dtype=None, graph_ops=None):
    """Pad & pack operands, one fused pallas_call covering all 3 layers + pool + LN."""
    if compute_dtype is None:
        compute_dtype = _default_compute_dtype()
    n, din = x.shape
    dh = params["wl1"].shape[1]
    dout = params["wl3"].shape[1]

    LANE = 128
    sub = 16 if compute_dtype == jnp.bfloat16 else 8     # native sublane tile of compute dtype
    din_p = ((din + LANE - 1) // LANE) * LANE             # layer-1 contraction width
    d_p = ((max(dh, dout) + LANE - 1) // LANE) * LANE     # hidden / output lane width
    n_p = ((n + sub - 1) // sub) * sub
    g_p = ((num_graphs + sub - 1) // sub) * sub

    if graph_ops is None:
        graph_ops = build_graph_operators(edge_index, batch, num_graphs, n)
    a, p, pa = graph_ops

    def pad2(m, rows, cols):
        out = jnp.zeros((rows, cols), jnp.float32)
        return out.at[: m.shape[0], : m.shape[1]].set(m.astype(jnp.float32))

    a_pad = pad2(a, n_p, n_p).astype(compute_dtype)
    pp = jnp.stack([pad2(pa, g_p, n_p), pad2(p, g_p, n_p)], axis=0).astype(compute_dtype)
    x_pad = pad2(x, n_p, din_p).astype(compute_dtype)

    w1 = jnp.stack([pad2(params["wl1"], din_p, d_p),
                    pad2(params["wr1"], din_p, d_p)], axis=0).astype(compute_dtype)
    w2 = jnp.stack([pad2(params["wl2"], d_p, d_p),
                    pad2(params["wr2"], d_p, d_p)], axis=0).astype(compute_dtype)
    # Layer-3 weights stay f32: the pooled (Gp x Dp) matmuls are tiny and feed LayerNorm.
    w3 = jnp.stack([pad2(params["wl3"], d_p, d_p),
                    pad2(params["wr3"], d_p, d_p)], axis=0)

    vecs = jnp.zeros((8, d_p), jnp.float32)
    vecs = vecs.at[0, :dh].set(params["b1"].reshape(-1))
    vecs = vecs.at[1, :dh].set(params["b2"].reshape(-1))
    vecs = vecs.at[2, :dout].set(params["b3"].reshape(-1))
    vecs = vecs.at[3, :dout].set(params["gamma"].reshape(-1))
    vecs = vecs.at[4, :dout].set(params["beta"].reshape(-1))
    vecs = vecs.at[5, :dout].set(1.0)                      # precomputed LayerNorm lane mask

    # VMEM budget from the actual footprint (operands + live f32 intermediates), with
    # headroom, capped at 48 MiB so v7x (64 MiB physical per TC) keeps compiler headroom.
    cd_b = jnp.dtype(compute_dtype).itemsize
    operand_bytes = (n_p * n_p * cd_b + 2 * g_p * n_p * cd_b + n_p * din_p * cd_b
                     + 2 * din_p * d_p * cd_b + 2 * d_p * d_p * cd_b
                     + 2 * d_p * d_p * 4 + 8 * d_p * 4 + g_p * d_p * 4)
    live_bytes = 4 * n_p * d_p * 4
    vmem_limit = int(min(max(3 * (operand_bytes + live_bytes), 32 * 1024 * 1024),
                         48 * 1024 * 1024))

    kernel = functools.partial(_sage_fused_kernel, dout=dout)
    vmem = pl.BlockSpec(memory_space=pltpu.MemorySpace.VMEM)
    out_pad = pl.pallas_call(
        kernel,
        out_shape=jax.ShapeDtypeStruct((g_p, d_p), jnp.float32),
        in_specs=[vmem] * 7,
        out_specs=vmem,
        compiler_params=pltpu.CompilerParams(vmem_limit_bytes=vmem_limit),
    )(a_pad, pp, x_pad, w1, w2, w3, vecs)
    return out_pad[:num_graphs, :dout]


def _reference_forward(x, edge_index, batch, params, num_graphs):
    """Pure-JAX f32 reference (unfused formulation) for validation."""
    n = x.shape[0]
    src, dst = edge_index[0], edge_index[1]
    a = jnp.zeros((n, n), jnp.float32).at[dst, src].add(1.0)
    a = a / jnp.maximum(jnp.sum(a, axis=1, keepdims=True), 1.0)
    p = jax.nn.one_hot(batch, num_graphs, dtype=jnp.float32).T
    p = p / jnp.maximum(jnp.sum(p, axis=1, keepdims=True), 1.0)

    def layer(h, wl, wr, b, relu):
        out = (a @ h) @ wl + h @ wr + b
        return jnp.maximum(out, 0.0) if relu else out

    h = layer(x, params["wl1"], params["wr1"], params["b1"], True)
    h = layer(h, params["wl2"], params["wr2"], params["b2"], True)
    h = layer(h, params["wl3"], params["wr3"], params["b3"], False)
    pooled = p @ h
    mu = jnp.mean(pooled, axis=-1, keepdims=True)
    var = jnp.mean((pooled - mu) ** 2, axis=-1, keepdims=True)
    return (pooled - mu) / jnp.sqrt(var + LN_EPS) * params["gamma"] + params["beta"]


def _init_params(key, input_dim, hidden_dim, output_dim):
    dims = [(input_dim, hidden_dim), (hidden_dim, hidden_dim), (hidden_dim, output_dim)]
    params = {}
    for idx, (din, dout) in enumerate(dims, start=1):
        key, k1, k2, k3 = jax.random.split(key, 4)
        scale = 1.0 / jnp.sqrt(jnp.float32(din))
        params[f"wl{idx}"] = jax.random.normal(k1, (din, dout), jnp.float32) * scale
        params[f"wr{idx}"] = jax.random.normal(k2, (din, dout), jnp.float32) * scale
        params[f"b{idx}"] = jax.random.normal(k3, (1, dout), jnp.float32) * 0.1
    key, kg, kb = jax.random.split(key, 3)
    params["gamma"] = 1.0 + 0.1 * jax.random.normal(kg, (1, output_dim), jnp.float32)
    params["beta"] = 0.1 * jax.random.normal(kb, (1, output_dim), jnp.float32)
    return params


if __name__ == "__main__":
    # Small shapes consistent with the module: 2 graphs x 8 nodes, input_dim=4,
    # hidden_dim=32, output_dim=16, num_layers=3.
    INPUT_DIM, HIDDEN_DIM, OUTPUT_DIM = 4, 32, 16
    NODES_PER_GRAPH, NUM_GRAPHS = 8, 2
    N = NODES_PER_GRAPH * NUM_GRAPHS

    key = jax.random.PRNGKey(0)
    key, kx = jax.random.split(key)
    x = jax.random.normal(kx, (N, INPUT_DIM), jnp.float32)

    # Deterministic bidirectional ring inside each graph.
    srcs, dsts = [], []
    for g in range(NUM_GRAPHS):
        base = g * NODES_PER_GRAPH
        for i in range(NODES_PER_GRAPH):
            u, v = base + i, base + (i + 1) % NODES_PER_GRAPH
            srcs += [u, v]
            dsts += [v, u]
    edge_index = jnp.array([srcs, dsts], dtype=jnp.int32)      # (2, 32)
    batch = jnp.repeat(jnp.arange(NUM_GRAPHS, dtype=jnp.int32), NODES_PER_GRAPH)

    params = _init_params(key, INPUT_DIM, HIDDEN_DIM, OUTPUT_DIM)

    # Graph operators depend only on the (static) graph batch: build once, reuse.
    graph_ops = build_graph_operators(edge_index, batch, NUM_GRAPHS, N)

    ref = _reference_forward(x, edge_index, batch, params, NUM_GRAPHS)

    # Strict correctness check with f32 compute.
    out_f32 = jax.block_until_ready(
        pattern_graphsage_forward(x, edge_index, batch, params, NUM_GRAPHS,
                                  compute_dtype=jnp.float32, graph_ops=graph_ops))
    assert out_f32.shape == (NUM_GRAPHS, OUTPUT_DIM)
    assert jnp.allclose(out_f32, ref, atol=1e-4, rtol=1e-4)

    # Fast path: generation-gated compute dtype (bf16 MXU + f32 accumulation on v6e/v7x,
    # f32 on v5e); layer-3 / pool / LayerNorm path is always f32.
    out_fast = jax.block_until_ready(
        pattern_graphsage_forward(x, edge_index, batch, params, NUM_GRAPHS,
                                  compute_dtype=None, graph_ops=graph_ops))
    assert out_fast.shape == (NUM_GRAPHS, OUTPUT_DIM)
    assert jnp.allclose(out_fast, ref, atol=1e-1, rtol=1e-1)

    print("KERNEL_OK")
</pallas_src>

<mosaic_0001>
module attributes {stable_mosaic.version = 11 : i64} {
  func.func @_sage_fused_kernel(%arg0: memref<16x16xf32, #tpu.memory_space<vmem>>, %arg1: memref<2x8x16xf32, #tpu.memory_space<vmem>>, %arg2: memref<16x128xf32, #tpu.memory_space<vmem>>, %arg3: memref<2x128x128xf32, #tpu.memory_space<vmem>>, %arg4: memref<2x128x128xf32, #tpu.memory_space<vmem>>, %arg5: memref<2x128x128xf32, #tpu.memory_space<vmem>>, %arg6: memref<8x128xf32, #tpu.memory_space<vmem>>, %arg7: memref<8x128xf32, #tpu.memory_space<vmem>>) attributes {dimension_semantics = [], scalar_prefetch = 0 : i64, scratch_operands = 0 : i64, tpu.core_type = #tpu.core_type<tc>} {
    %c0 = arith.constant 0 : index
    %c0_0 = arith.constant 0 : index
    %0 = vector.load %arg0[%c0, %c0_0] : memref<16x16xf32, #tpu.memory_space<vmem>>, vector<16x16xf32>
    %c0_1 = arith.constant 0 : index
    %c0_2 = arith.constant 0 : index
    %1 = vector.load %arg6[%c0_1, %c0_2] : memref<8x128xf32, #tpu.memory_space<vmem>>, vector<8x128xf32>
    %2 = vector.extract_strided_slice %1 {offsets = [0, 0], sizes = [1, 128], strides = [1, 1]} : vector<8x128xf32> to vector<1x128xf32>
    %3 = vector.extract_strided_slice %1 {offsets = [1, 0], sizes = [1, 128], strides = [1, 1]} : vector<8x128xf32> to vector<1x128xf32>
    %4 = vector.extract_strided_slice %1 {offsets = [2, 0], sizes = [1, 128], strides = [1, 1]} : vector<8x128xf32> to vector<1x128xf32>
    %5 = vector.extract_strided_slice %1 {offsets = [3, 0], sizes = [1, 128], strides = [1, 1]} : vector<8x128xf32> to vector<1x128xf32>
    %6 = vector.extract_strided_slice %1 {offsets = [4, 0], sizes = [1, 128], strides = [1, 1]} : vector<8x128xf32> to vector<1x128xf32>
    %7 = vector.extract_strided_slice %1 {offsets = [5, 0], sizes = [1, 128], strides = [1, 1]} : vector<8x128xf32> to vector<1x128xf32>
    %c0_3 = arith.constant 0 : index
    %c0_4 = arith.constant 0 : index
    %8 = vector.load %arg2[%c0_3, %c0_4] : memref<16x128xf32, #tpu.memory_space<vmem>>, vector<16x128xf32>
    %cst = arith.constant dense<0.000000e+00> : vector<16x128xf32>
    %9 = tpu.matmul %0, %8, %cst {dimension_numbers = #tpu.dot_dimension_numbers<[1], [0], [0], [1], [0, 0, 1, 1], [], []>} : vector<16x16xf32>, vector<16x128xf32>, vector<16x128xf32> -> vector<16x128xf32>
    %c0_5 = arith.constant 0 : index
    %c0_6 = arith.constant 0 : index
    %c0_7 = arith.constant 0 : index
    %10 = vector.load %arg3[%c0_5, %c0_6, %c0_7] : memref<2x128x128xf32, #tpu.memory_space<vmem>>, vector<1x128x128xf32>
    %11 = vector.shape_cast %10 : vector<1x128x128xf32> to vector<128x128xf32>
    %cst_8 = arith.constant dense<0.000000e+00> : vector<16x128xf32>
    %12 = tpu.matmul %9, %11, %cst_8 {dimension_numbers = #tpu.dot_dimension_numbers<[1], [0], [0], [1], [0, 0, 1, 1], [], []>} : vector<16x128xf32>, vector<128x128xf32>, vector<16x128xf32> -> vector<16x128xf32>
    %c1 = arith.constant 1 : index
    %c0_9 = arith.constant 0 : index
    %c0_10 = arith.constant 0 : index
    %13 = vector.load %arg3[%c1, %c0_9, %c0_10] : memref<2x128x128xf32, #tpu.memory_space<vmem>>, vector<1x128x128xf32>
    %14 = vector.shape_cast %13 : vector<1x128x128xf32> to vector<128x128xf32>
    %cst_11 = arith.constant dense<0.000000e+00> : vector<16x128xf32>
    %15 = tpu.matmul %8, %14, %cst_11 {dimension_numbers = #tpu.dot_dimension_numbers<[1], [0], [0], [1], [0, 0, 1, 1], [], []>} : vector<16x128xf32>, vector<128x128xf32>, vector<16x128xf32> -> vector<16x128xf32>
    %16 = arith.addf %12, %15 : vector<16x128xf32>
    %17 = vector.broadcast %2 : vector<1x128xf32> to vector<16x128xf32>
    %18 = arith.addf %16, %17 : vector<16x128xf32>
    %cst_12 = arith.constant 0.000000e+00 : f32
    %19 = vector.broadcast %cst_12 : f32 to vector<16x128xf32>
    %20 = arith.maximumf %18, %19 : vector<16x128xf32>
    %cst_13 = arith.constant dense<0.000000e+00> : vector<16x128xf32>
    %21 = tpu.matmul %0, %20, %cst_13 {dimension_numbers = #tpu.dot_dimension_numbers<[1], [0], [0], [1], [0, 0, 1, 1], [], []>} : vector<16x16xf32>, vector<16x128xf32>, vector<16x128xf32> -> vector<16x128xf32>
    %c0_14 = arith.constant 0 : index
    %c0_15 = arith.constant 0 : index
    %c0_16 = arith.constant 0 : index
    %22 = vector.load %arg4[%c0_14, %c0_15, %c0_16] : memref<2x128x128xf32, #tpu.memory_space<vmem>>, vector<1x128x128xf32>
    %23 = vector.shape_cast %22 : vector<1x128x128xf32> to vector<128x128xf32>
    %cst_17 = arith.constant dense<0.000000e+00> : vector<16x128xf32>
    %24 = tpu.matmul %21, %23, %cst_17 {dimension_numbers = #tpu.dot_dimension_numbers<[1], [0], [0], [1], [0, 0, 1, 1], [], []>} : vector<16x128xf32>, vector<128x128xf32>, vector<16x128xf32> -> vector<16x128xf32>
    %c1_18 = arith.constant 1 : index
    %c0_19 = arith.constant 0 : index
    %c0_20 = arith.constant 0 : index
    %25 = vector.load %arg4[%c1_18, %c0_19, %c0_20] : memref<2x128x128xf32, #tpu.memory_space<vmem>>, vector<1x128x128xf32>
    %26 = vector.shape_cast %25 : vector<1x128x128xf32> to vector<128x128xf32>
    %cst_21 = arith.constant dense<0.000000e+00> : vector<16x128xf32>
    %27 = tpu.matmul %20, %26, %cst_21 {dimension_numbers = #tpu.dot_dimension_numbers<[1], [0], [0], [1], [0, 0, 1, 1], [], []>} : vector<16x128xf32>, vector<128x128xf32>, vector<16x128xf32> -> vector<16x128xf32>
    %28 = arith.addf %24, %27 : vector<16x128xf32>
    %29 = vector.broadcast %3 : vector<1x128xf32> to vector<16x128xf32>
    %30 = arith.addf %28, %29 : vector<16x128xf32>
    %cst_22 = arith.constant 0.000000e+00 : f32
    %31 = vector.broadcast %cst_22 : f32 to vector<16x128xf32>
    %32 = arith.maximumf %30, %31 : vector<16x128xf32>
    %c0_23 = arith.constant 0 : index
    %c0_24 = arith.constant 0 : index
    %c0_25 = arith.constant 0 : index
    %33 = vector.load %arg1[%c0_23, %c0_24, %c0_25] : memref<2x8x16xf32, #tpu.memory_space<vmem>>, vector<1x8x16xf32>
    %34 = vector.shape_cast %33 : vector<1x8x16xf32> to vector<8x16xf32>
    %cst_26 = arith.constant dense<0.000000e+00> : vector<8x128xf32>
    %35 = tpu.matmul %34, %32, %cst_26 {dimension_numbers = #tpu.dot_dimension_numbers<[1], [0], [0], [1], [0, 0, 1, 1], [], []>} : vector<8x16xf32>, vector<16x128xf32>, vector<8x128xf32> -> vector<8x128xf32>
    %c1_27 = arith.constant 1 : index
    %c0_28 = arith.constant 0 : index
    %c0_29 = arith.constant 0 : index
    %36 = vector.load %arg1[%c1_27, %c0_28, %c0_29] : memref<2x8x16xf32, #tpu.memory_space<vmem>>, vector<1x8x16xf32>
    %37 = vector.shape_cast %36 : vector<1x8x16xf32> to vector<8x16xf32>
    %cst_30 = arith.constant dense<0.000000e+00> : vector<8x128xf32>
    %38 = tpu.matmul %37, %32, %cst_30 {dimension_numbers = #tpu.dot_dimension_numbers<[1], [0], [0], [1], [0, 0, 1, 1], [], []>} : vector<8x16xf32>, vector<16x128xf32>, vector<8x128xf32> -> vector<8x128xf32>
    %c0_31 = arith.constant 0 : index
    %c0_32 = arith.constant 0 : index
    %c0_33 = arith.constant 0 : index
    %39 = vector.load %arg5[%c0_31, %c0_32, %c0_33] : memref<2x128x128xf32, #tpu.memory_space<vmem>>, vector<1x128x128xf32>
    %40 = vector.shape_cast %39 : vector<1x128x128xf32> to vector<128x128xf32>
    %cst_34 = arith.constant dense<0.000000e+00> : vector<8x128xf32>
    %41 = tpu.matmul %35, %40, %cst_34 {dimension_numbers = #tpu.dot_dimension_numbers<[1], [0], [0], [1], [0, 0, 1, 1], [], []>} : vector<8x128xf32>, vector<128x128xf32>, vector<8x128xf32> -> vector<8x128xf32>
    %c1_35 = arith.constant 1 : index
    %c0_36 = arith.constant 0 : index
    %c0_37 = arith.constant 0 : index
    %42 = vector.load %arg5[%c1_35, %c0_36, %c0_37] : memref<2x128x128xf32, #tpu.memory_space<vmem>>, vector<1x128x128xf32>
    %43 = vector.shape_cast %42 : vector<1x128x128xf32> to vector<128x128xf32>
    %cst_38 = arith.constant dense<0.000000e+00> : vector<8x128xf32>
    %44 = tpu.matmul %38, %43, %cst_38 {dimension_numbers = #tpu.dot_dimension_numbers<[1], [0], [0], [1], [0, 0, 1, 1], [], []>} : vector<8x128xf32>, vector<128x128xf32>, vector<8x128xf32> -> vector<8x128xf32>
    %45 = arith.addf %41, %44 : vector<8x128xf32>
    %46 = vector.broadcast %4 : vector<1x128xf32> to vector<8x128xf32>
    %47 = arith.addf %45, %46 : vector<8x128xf32>
    %cst_39 = arith.constant dense<0.000000e+00> : vector<8xf32>
    %48 = vector.multi_reduction <add>, %47, %cst_39 [1] : vector<8x128xf32> to vector<8xf32>
    %49 = vector.shape_cast %48 : vector<8xf32> to vector<8x1xf32>
    %cst_40 = arith.constant 6.250000e-02 : f32
    %50 = vector.broadcast %cst_40 : f32 to vector<8x1xf32>
    %51 = arith.mulf %49, %50 : vector<8x1xf32>
    %52 = vector.broadcast %51 : vector<8x1xf32> to vector<8x128xf32>
    %53 = arith.subf %47, %52 : vector<8x128xf32>
    %54 = vector.broadcast %7 : vector<1x128xf32> to vector<8x128xf32>
    %55 = arith.mulf %53, %54 : vector<8x128xf32>
    %56 = arith.mulf %55, %55 : vector<8x128xf32>
    %cst_41 = arith.constant dense<0.000000e+00> : vector<8xf32>
    %57 = vector.multi_reduction <add>, %56, %cst_41 [1] : vector<8x128xf32> to vector<8xf32>
    %58 = vector.shape_cast %57 : vector<8xf32> to vector<8x1xf32>
    %cst_42 = arith.constant 6.250000e-02 : f32
    %59 = vector.broadcast %cst_42 : f32 to vector<8x1xf32>
    %60 = arith.mulf %58, %59 : vector<8x1xf32>
    %cst_43 = arith.constant 9.99999974E-6 : f32
    %61 = vector.broadcast %cst_43 : f32 to vector<8x1xf32>
    %62 = arith.addf %60, %61 : vector<8x1xf32>
    %63 = math.rsqrt %62 : vector<8x1xf32>
    %64 = vector.broadcast %63 : vector<8x1xf32> to vector<8x128xf32>
    %65 = arith.mulf %55, %64 : vector<8x128xf32>
    %66 = vector.broadcast %5 : vector<1x128xf32> to vector<8x128xf32>
    %67 = arith.mulf %65, %66 : vector<8x128xf32>
    %68 = vector.broadcast %6 : vector<1x128xf32> to vector<8x128xf32>
    %69 = arith.addf %67, %68 : vector<8x128xf32>
    %c0_44 = arith.constant 0 : index
    %c0_45 = arith.constant 0 : index
    %70 = vector.load %arg7[%c0_44, %c0_45] : memref<8x128xf32, #tpu.memory_space<vmem>>, vector<8x128xf32>
    tpu.vector_store %arg7[%c0_44, %c0_45], %69 {strides = array<i32>} : memref<8x128xf32, #tpu.memory_space<vmem>>, vector<8x128xf32>,
    return
  }
}

</mosaic_0001>

<bundles_post_ra>
// kernel: tpu_custom_call.1
= control target key start
LH: loop header
LB: loop body
LE: loop exit
PB: predicated region body
PF: predicated region fallthrough
CT: control target
= control target key end

     0   :  { %12 = vsyncpa [#allocation3], 0  ;;  %s1991_s0 = inlined_call_operand.hbm [shape: f32[16,16], index: 0, kind: input, shape index: {}]   ;;  %s1992_s1 = inlined_call_operand.hbm [shape: f32[2,8,16], index: 1, kind: input, shape index: {}]   ;;  %s1993_s2 = inlined_call_operand.hbm [shape: f32[16,128], index: 2, kind: input, shape index: {}]   ;;  %s1994_s3 = inlined_call_operand.hbm [shape: f32[2,128,128], index: 3, kind: input, shape index: {}]   ;;  %s1995_s4 = inlined_call_operand.hbm [shape: f32[2,128,128], index: 4, kind: input, shape index: {}]   ;;  %s1996_s5 = inlined_call_operand.hbm [shape: f32[2,128,128], index: 5, kind: input, shape index: {}]   ;;  %s1997_s6 = inlined_call_operand.vmem [shape: f32[8,128], index: 6, kind: input, shape index: {}]   ;;  %s1998_s7 = inlined_call_operand.hbm [shape: f32[8,128], index: 7, kind: output, shape index: {}]  }
   0x1   :  { %13 = vsyncpa [#allocation6], 0 }
   0x2   :  { %14 = vsyncpa [#allocation9], 0 }
   0x3   :  { %15 = vsyncpa [#allocation12], 0 }
   0x4   :  { %16 = vsyncpa [#allocation4], 0  ;;  %s1761_s24 = smov [#allocation5]   ;;  %s1762_s26 = smov [#allocation8]  }
   0x5   :  { %s34_s25 = sshll.u32 %s1761_s24, 4  ;;  %s58_s27 = sshll.u32 %s1762_s26, 4  ;;  %s35_s25 = int_to_ptr.vmem [resolvable:$true] %s34_s25  ;;  %s1813_s27 = int_to_ptr.vmem [resolvable:$true] %s58_s27 }
   0x6   :  { %s1597_s30 = scalar_lea.hbm %s1992_s1, 256 }
   0x7   :  { %p1598_p0 = scmp.ne.s32.totalorder %s1992_s1, %s1597_s30  ;;  %p1601_p1 = scmp.lt.u32.totalorder %s1597_s30, %s1992_s1 }
   0x9   :  { %p1603_p2 = pnand %p1601_p1, %p1598_p0 }
   0xb   :  { %1606 = shalt.err (!%p1603_p2)
}
   0xc   :  { %s1607_s12 = scalar_lea.vmem %s35_s25, 256  ;;  %p1612_p4 = scmp.lt.s32.totalorder %s35_s25, %s35_s25 }
   0xd   :  { %p1608_p3 = scmp.ne.s32.totalorder %s35_s25, %s1607_s12  ;;  %p1613_p5 = scmp.lt.s32.totalorder %s1607_s12, %s1607_s12 }
   0xf   :  { %p1614_p6 = por %p1613_p5, %p1612_p4 }
  0x11   :  { %p1615_p7 = pnand %p1614_p6, %p1608_p3 }
  0x13   :  { %1618 = shalt.err (!%p1615_p7)
}
  0x14   :  { %s1763_s13 = smov 128   ;;  %s1764_s14 = smov 8  }
  0x15   :  { %40 = dma.hbm_to_vmem [thread:$0]  %s1992_s1, 256, %s35_s25, [#allocation6], %s1763_s13, %s1763_s13, %s1764_s14  }
  0x16   :  { %s1619_s19 = scalar_lea.hbm %s1994_s3, 4096 }
  0x17   :  { %p1620_p8 = scmp.ne.s32.totalorder %s1994_s3, %s1619_s19  ;;  %p1623_p9 = scmp.lt.u32.totalorder %s1619_s19, %s1994_s3 }
  0x19   :  { %p1625_p10 = pnand %p1623_p9, %p1620_p8 }
  0x1b   :  { %1628 = shalt.err (!%p1625_p10)
}
  0x1c   :  { %s1629_s24 = scalar_lea.vmem %s1813_s27, 4096  ;;  %p1634_p12 = scmp.lt.s32.totalorder %s1813_s27, %s1813_s27 }
  0x1d   :  { %p1630_p11 = scmp.ne.s32.totalorder %s1813_s27, %s1629_s24  ;;  %p1635_p13 = scmp.lt.s32.totalorder %s1629_s24, %s1629_s24 }
  0x1f   :  { %p1636_p0 = por %p1635_p13, %p1634_p12 }
  0x21   :  { %p1637_p1 = pnand %p1636_p0, %p1630_p11 }
  0x23   :  { %1640 = shalt.err (!%p1637_p1)
}
  0x24   :  { %64 = dma.hbm_to_vmem [thread:$0]  %s1994_s3, 4096, %s1813_s27, [#allocation9], %s1763_s13, %s1763_s13, %s1764_s14  }
  0x25   :  { %s1765_s26 = smov [#allocation2]   ;;  %s1766_s29 = smov [#allocation7]  }
  0x26   :  { %s22_s28 = sshll.u32 %s1765_s26, 4  ;;  %s46_s30 = sshll.u32 %s1766_s29, 4  ;;  %s23_s28 = int_to_ptr.vmem [resolvable:$true] %s22_s28  ;;  %s1850_s30 = int_to_ptr.vmem [resolvable:$true] %s46_s30 }
  0x27   :  { %s1641_s10 = scalar_lea.hbm %s1991_s0, 256 }
  0x28   :  { %p1642_p2 = scmp.ne.s32.totalorder %s1991_s0, %s1641_s10  ;;  %p1645_p3 = scmp.lt.u32.totalorder %s1641_s10, %s1991_s0 }
  0x2a   :  { %p1647_p4 = pnand %p1645_p3, %p1642_p2 }
  0x2c   :  { %1650 = shalt.err (!%p1647_p4)
}
  0x2d   :  { %s1651_s3 = scalar_lea.vmem %s23_s28, 256  ;;  %p1656_p6 = scmp.lt.s32.totalorder %s23_s28, %s23_s28 }
  0x2e   :  { %p1652_p5 = scmp.ne.s32.totalorder %s23_s28, %s1651_s3  ;;  %p1657_p7 = scmp.lt.s32.totalorder %s1651_s3, %s1651_s3 }
  0x30   :  { %p1658_p8 = por %p1657_p7, %p1656_p6 }
  0x32   :  { %p1659_p9 = pnand %p1658_p8, %p1652_p5 }
  0x34   :  { %1662 = shalt.err (!%p1659_p9)
}
  0x35   :  { %28 = dma.hbm_to_vmem [thread:$0]  %s1991_s0, 256, %s23_s28, [#allocation3], %s1763_s13, %s1763_s13, %s1764_s14  }
  0x36   :  { %s1663_s20 = scalar_lea.hbm %s1993_s2, 256 }
  0x37   :  { %p1664_p10 = scmp.ne.s32.totalorder %s1993_s2, %s1663_s20  ;;  %p1667_p11 = scmp.lt.u32.totalorder %s1663_s20, %s1993_s2 }
  0x39   :  { %p1669_p12 = pnand %p1667_p11, %p1664_p10 }
  0x3b   :  { %1672 = shalt.err (!%p1669_p12)
}
  0x3c   :  { %s1673_s1 = scalar_lea.vmem %s1850_s30, 256  ;;  %p1678_p0 = scmp.lt.s32.totalorder %s1850_s30, %s1850_s30 }
  0x3d   :  { %p1674_p13 = scmp.ne.s32.totalorder %s1850_s30, %s1673_s1  ;;  %p1679_p1 = scmp.lt.s32.totalorder %s1673_s1, %s1673_s1 }
  0x3f   :  { %p1680_p2 = por %p1679_p1, %p1678_p0 }
  0x41   :  { %p1681_p3 = pnand %p1680_p2, %p1674_p13 }
  0x43   :  { %1684 = shalt.err (!%p1681_p3)
}
  0x44   :  { %52 = dma.hbm_to_vmem [thread:$0]  %s1993_s2, 256, %s1850_s30, [#allocation6], %s1763_s13, %s1763_s13, %s1764_s14  }
  0x45   :  { %s1767_s26 = smov [#allocation10]   ;;  %s1768_s29 = smov [#allocation11]  }
  0x46   :  { %s70_s28 = sshll.u32 %s1767_s26, 4  ;;  %s82_s8 = sshll.u32 %s1768_s29, 4  ;;  %s71_s28 = int_to_ptr.vmem [resolvable:$true] %s70_s28  ;;  %s1887_s8 = int_to_ptr.vmem [resolvable:$true] %s82_s8 }
  0x47   :  { %s1685_s11 = scalar_lea.hbm %s1995_s4, 4096 }
  0x48   :  { %p1686_p4 = scmp.ne.s32.totalorder %s1995_s4, %s1685_s11  ;;  %p1689_p5 = scmp.lt.u32.totalorder %s1685_s11, %s1995_s4 }
  0x4a   :  { %p1691_p6 = pnand %p1689_p5, %p1686_p4 }
  0x4c   :  { %1694 = shalt.err (!%p1691_p6)
}
  0x4d   :  { %s1695_s2 = scalar_lea.vmem %s71_s28, 4096  ;;  %p1700_p8 = scmp.lt.s32.totalorder %s71_s28, %s71_s28 }
  0x4e   :  { %p1696_p7 = scmp.ne.s32.totalorder %s71_s28, %s1695_s2  ;;  %p1701_p9 = scmp.lt.s32.totalorder %s1695_s2, %s1695_s2 }
  0x50   :  { %p1702_p10 = por %p1701_p9, %p1700_p8 }
  0x52   :  { %p1703_p11 = pnand %p1702_p10, %p1696_p7 }
  0x54   :  { %1706 = shalt.err (!%p1703_p11)
}
  0x55   :  { %76 = dma.hbm_to_vmem [thread:$0]  %s1995_s4, 4096, %s71_s28, [#allocation9], %s1763_s13, %s1763_s13, %s1764_s14  }
  0x56   :  { %s1707_s19 = scalar_lea.hbm %s1996_s5, 4096 }
  0x57   :  { %p1708_p12 = scmp.ne.s32.totalorder %s1996_s5, %s1707_s19  ;;  %p1711_p13 = scmp.lt.u32.totalorder %s1707_s19, %s1996_s5 }
  0x59   :  { %p1713_p0 = pnand %p1711_p13, %p1708_p12 }
  0x5b   :  { %1716 = shalt.err (!%p1713_p0)
}
  0x5c   :  { %s1717_s24 = scalar_lea.vmem %s1887_s8, 4096  ;;  %p1722_p2 = scmp.lt.s32.totalorder %s1887_s8, %s1887_s8 }
  0x5d   :  { %p1718_p1 = scmp.ne.s32.totalorder %s1887_s8, %s1717_s24  ;;  %p1723_p3 = scmp.lt.s32.totalorder %s1717_s24, %s1717_s24 }
  0x5f   :  { %p1724_p4 = por %p1723_p3, %p1722_p2 }
  0x61   :  { %p1725_p5 = pnand %p1724_p4, %p1718_p1 }
  0x63   :  { %1728 = shalt.err (!%p1725_p5)
}
  0x64   :  { %88 = dma.hbm_to_vmem [thread:$0]  %s1996_s5, 4096, %s1887_s8, [#allocation12], %s1763_s13, %s1763_s13, %s1764_s14  }
  0x65   :  { %1751 = dma.done.wait [#allocation3], 256  }
  0x66   :  { %1752 = vsyncadd [#allocation3], 4294967040 }
  0x67   :  { %1753 = dma.done.wait [#allocation6], 512  }
  0x68   :  { %1754 = vsyncadd [#allocation6], 4294966784 }
  0x69   :  { %1755 = dma.done.wait [#allocation9], 8192  }
  0x6a   :  { %1756 = vsyncadd [#allocation9], 4294959104 }
  0x6b   :  { %1757 = dma.done.wait [#allocation12], 4096  }
  0x6c   :  { %1758 = vsyncadd [#allocation12], 4294963200  ;;  %vm114_vm0 = vcmask 130048   ;;  %v112_v0 = vld [vmem:[#allocation7] sm:$0xff]  ;;  %v113_v1 = vld [vmem:[#allocation7 + $0x8] sm:$0xff]  ;;  %v379_v55 = vlaneseq  ;;  %vm1770_vm1 = vmmov 0  }
  0x6d   :  { %v109_v2 = vld [vmem:[#allocation2] sm:$0xff]  ;;  %v1389_v3 = vpack.c.bf16 %v113_v1, %v112_v0  ;;  %v213_v4 = vld [vmem:[#allocation8 + $0x80] sm:$0xff]  ;;  %v214_v5 = vld [vmem:[#allocation8 + $0x88] sm:$0xff]  ;;  %1190 = vmatprep.mubr.f32.mxu1 %v112_v0 }
  0x6e   :  { %1155 = vmatprep.mubr.msk.f32.mxu0 %vm114_vm0, %v109_v2  ;;  %v1393_v6 = vpack.c.bf16 %v214_v5, %v213_v4  ;;  %v215_v7 = vld [vmem:[#allocation8 + $0x90] sm:$0xff]  ;;  %v216_v8 = vld [vmem:[#allocation8 + $0x98] sm:$0xff]  ;;  %v217_v10 = vld [vmem:[#allocation8 + $0xa0] sm:$0xff]  ;;  %v1930_v56 = vshrl.u32 %v379_v55, 7 }
  0x6f   :  { %1390 = vmatprep.subr.bf16.mxu0 %v1389_v3  ;;  %v1397_v9 = vpack.c.bf16 %v216_v8, %v215_v7  ;;  %v218_v11 = vld [vmem:[#allocation8 + $0xa8] sm:$0xff]  ;;  %v1925_v12 = vld [vmem:[#allocation2 + $0x8] sm:$0xff]  ;;  %v219_v14 = vld [vmem:[#allocation8 + $0xb0] sm:$0xff] }
  0x70   :  { %1392 = vmatpush3.bf16.msra.mxu0 %v1389_v3  ;;  %1394 = vmatprep.subr.bf16.mxu1 %v1393_v6  ;;  %v1401_v13 = vpack.c.bf16 %v218_v11, %v217_v10  ;;  %v220_v15 = vld [vmem:[#allocation8 + $0xb8] sm:$0xff]  ;;  %v221_v17 = vld [vmem:[#allocation8 + $0xc0] sm:$0xff]  ;;  %v222_v18 = vld [vmem:[#allocation8 + $0xc8] sm:$0xff]  ;;  %v381_v57 = vsub.s32 0, %v1930_v56 }
  0x71   :  { %1396 = vmatpush3.bf16.msra.mxu1 %v1393_v6  ;;  %v1405_v16 = vpack.c.bf16 %v220_v15, %v219_v14  ;;  %v1409_v19 = vpack.c.bf16 %v222_v18, %v221_v17  ;;  %v223_v20 = vld [vmem:[#allocation8 + $0xd0] sm:$0xff]  ;;  %v224_v21 = vld [vmem:[#allocation8 + $0xd8] sm:$0xff]  ;;  %v225_v23 = vld [vmem:[#allocation8 + $0xe0] sm:$0xff] }
  0x72   :  { %1398 = vmatprep.subr.bf16.mxu1 %v1397_v9  ;;  %v1413_v22 = vpack.c.bf16 %v224_v21, %v223_v20  ;;  %v226_v24 = vld [vmem:[#allocation8 + $0xe8] sm:$0xff]  ;;  %v227_v26 = vld [vmem:[#allocation8 + $0xf0] sm:$0xff]  ;;  %v228_v27 = vld [vmem:[#allocation8 + $0xf8] sm:$0xff] }
  0x73   :  { %1156 = vmatmul.mubr.msk.f32.vlgmr.msra.gmra.mrb[0].mxu0 %vm114_vm0, %v1925_v12  ;;  %v1417_v25 = vpack.c.bf16 %v226_v24, %v225_v23  ;;  %v1421_v28 = vpack.c.bf16 %v228_v27, %v227_v26  ;;  %v196_v29 = vld [vmem:[#allocation8] sm:$0xff]  ;;  %v197_v30 = vld [vmem:[#allocation8 + $0x8] sm:$0xff]  ;;  %v198_v32 = vld [vmem:[#allocation8 + $0x10] sm:$0xff] }
  0x74   :  { %1232 = vmatprep.mubr.msk.f32.mxu0 %vm114_vm0, %v109_v2  ;;  %v1425_v31 = vpack.c.bf16 %v197_v30, %v196_v29  ;;  %v199_v33 = vld [vmem:[#allocation8 + $0x18] sm:$0xff]  ;;  %v200_v35 = vld [vmem:[#allocation8 + $0x20] sm:$0xff]  ;;  %v201_v36 = vld [vmem:[#allocation8 + $0x28] sm:$0xff] }
  0x75   :  { %1400 = vmatpush3.bf16.msra.mxu1 %v1397_v9  ;;  %v1429_v34 = vpack.c.bf16 %v199_v33, %v198_v32  ;;  %v1433_v37 = vpack.c.bf16 %v201_v36, %v200_v35  ;;  %v202_v38 = vld [vmem:[#allocation8 + $0x30] sm:$0xff]  ;;  %v203_v39 = vld [vmem:[#allocation8 + $0x38] sm:$0xff]  ;;  %v204_v41 = vld [vmem:[#allocation8 + $0x40] sm:$0xff] }
  0x76   :  { %1402 = vmatprep.subr.bf16.mxu1 %v1401_v13  ;;  %v1437_v40 = vpack.c.bf16 %v203_v39, %v202_v38  ;;  %v205_v42 = vld [vmem:[#allocation8 + $0x48] sm:$0xff]  ;;  %v206_v44 = vld [vmem:[#allocation8 + $0x50] sm:$0xff]  ;;  %v207_v45 = vld [vmem:[#allocation8 + $0x58] sm:$0xff] }
  0x77   :  { %v1441_v43 = vpack.c.bf16 %v205_v42, %v204_v41  ;;  %v1445_v46 = vpack.c.bf16 %v207_v45, %v206_v44  ;;  %v208_v47 = vld [vmem:[#allocation8 + $0x60] sm:$0xff]  ;;  %v209_v48 = vld [vmem:[#allocation8 + $0x68] sm:$0xff]  ;;  %v210_v50 = vld [vmem:[#allocation8 + $0x70] sm:$0xff] }
  0x78   :  { %v1449_v49 = vpack.c.bf16 %v209_v48, %v208_v47  ;;  %v211_v51 = vld [vmem:[#allocation8 + $0x78] sm:$0xff]  ;;  %v1936_v58 = vld [vmem:[%s1997_s6] sm:$0xff]  ;;  %v480_v2 = vld [vmem:[#allocation10 + $0x88] sm:$0xff]  ;;  %s1772_s6 = smov [#allocation13]  }
  0x79   :  { %1404 = vmatpush3.bf16.msra.mxu1 %v1401_v13  ;;  %v1453_v52 = vpack.c.bf16 %v211_v51, %v210_v50  ;;  %v382_v59 = vrot.slane %v1936_v58, %v381_v57  ;;  %v481_v6 = vld [vmem:[#allocation10 + $0x90] sm:$0xff]  ;;  %v482_v7 = vld [vmem:[#allocation10 + $0x98] sm:$0xff]  ;;  %v483_v9 = vld [vmem:[#allocation10 + $0xa0] sm:$0xff]  ;;  %s1013_s14 = sshll.u32 %s1772_s6, 4  ;;  %s1014_s14 = int_to_ptr.vmem [resolvable:$true] %s1013_s14 }
  0x7a   :  { %1406 = vmatprep.subr.bf16.mxu1 %v1405_v16  ;;  %v1465_v8 = vpack.c.bf16 %v482_v7, %v481_v6  ;;  %v484_v10 = vld [vmem:[#allocation10 + $0xa8] sm:$0xff]  ;;  %v485_v13 = vld [vmem:[#allocation10 + $0xb0] sm:$0xff]  ;;  %v486_v14 = vld [vmem:[#allocation10 + $0xb8] sm:$0xff]  ;;  %s1729_s0 = scalar_lea.vmem %s1014_s14, 128  ;;  %p1734_p7 = scmp.lt.s32.totalorder %s1014_s14, %s1014_s14 }
  0x7b   :  { %v1469_v11 = vpack.c.bf16 %v484_v10, %v483_v9  ;;  %v1473_v15 = vpack.c.bf16 %v486_v14, %v485_v13  ;;  %v488_v17 = vld [vmem:[#allocation10 + $0xc8] sm:$0xff]  ;;  %v490_v20 = vld [vmem:[#allocation10 + $0xd8] sm:$0xff]  ;;  %v493_v24 = vld [vmem:[#allocation10 + $0xf0] sm:$0xff]  ;;  %p1730_p6 = scmp.ne.s32.totalorder %s1014_s14, %s1729_s0  ;;  %p1735_p8 = scmp.lt.s32.totalorder %s1729_s0, %s1729_s0 }
  0x7c   :  { %v462_v27 = vld [vmem:[#allocation10] sm:$0xff]  ;;  %v464_v30 = vld [vmem:[#allocation10 + $0x10] sm:$0xff]  ;;  %v820_v57 = vld [vmem:[#allocation11 + $0x88] sm:$0xff] }
  0x7d   :  { %1408 = vmatpush3.bf16.msra.mxu1 %v1405_v16  ;;  %v487_v16 = vld [vmem:[#allocation10 + $0xc0] sm:$0xff]  ;;  %v468_v36 = vld [vmem:[#allocation10 + $0x30] sm:$0xff]  ;;  %v828_v6 = vld [vmem:[#allocation11 + $0xc8] sm:$0xff]  ;;  %p1736_p9 = por %p1735_p8, %p1734_p7 }
  0x7e   :  { %1410 = vmatprep.subr.bf16.mxu1 %v1409_v19  ;;  %v1477_v18 = vpack.c.bf16 %v488_v17, %v487_v16  ;;  %v466_v33 = vld [vmem:[#allocation10 + $0x20] sm:$0xff]  ;;  %v472_v42 = vld [vmem:[#allocation10 + $0x50] sm:$0xff]  ;;  %v830_v9 = vld [vmem:[#allocation11 + $0xd8] sm:$0xff] }
  0x7f   :  { %v470_v39 = vld [vmem:[#allocation10 + $0x40] sm:$0xff]  ;;  %v476_v48 = vld [vmem:[#allocation10 + $0x70] sm:$0xff]  ;;  %v832_v13 = vld [vmem:[#allocation11 + $0xe8] sm:$0xff]  ;;  %p1737_p10 = pnand %p1736_p9, %p1730_p6 }
  0x80   :  { %v474_v45 = vld [vmem:[#allocation10 + $0x60] sm:$0xff] }
  0x81   :  { %1412 = vmatpush3.bf16.msra.mxu1 %v1409_v19  ;;  %v489_v19 = vld [vmem:[#allocation10 + $0xd0] sm:$0xff]  ;;  %v819_v55 = vld [vmem:[#allocation11 + $0x80] sm:$0xff] }
  0x82   :  { %1414 = vmatprep.subr.bf16.mxu1 %v1413_v22  ;;  %v1481_v21 = vpack.c.bf16 %v490_v20, %v489_v19 }
  0x85   :  { %1416 = vmatpush3.bf16.msra.mxu1 %v1413_v22  ;;  %v492_v22 = vld [vmem:[#allocation10 + $0xe8] sm:$0xff] }
  0x86   :  { %1418 = vmatprep.subr.bf16.mxu1 %v1417_v25 }
  0x89   :  { %1420 = vmatpush3.bf16.msra.mxu1 %v1417_v25  ;;  %v494_v25 = vld [vmem:[#allocation10 + $0xf8] sm:$0xff] }
  0x8a   :  { %1422 = vmatprep.subr.bf16.mxu1 %v1421_v28  ;;  %v1489_v26 = vpack.c.bf16 %v494_v25, %v493_v24  ;;  %v802_v24 = vld [vmem:[#allocation11] sm:$0xff]  ;;  %v803_v25 = vld [vmem:[#allocation11 + $0x8] sm:$0xff] }
  0x8d   :  { %1424 = vmatpush3.bf16.msra.mxu1 %v1421_v28  ;;  %v463_v28 = vld [vmem:[#allocation10 + $0x8] sm:$0xff] }
  0x8e   :  { %1426 = vmatprep.subr.bf16.mxu1 %v1425_v31  ;;  %v1493_v29 = vpack.c.bf16 %v463_v28, %v462_v27  ;;  %v1556_v27 = vpack.c.bf16 %v803_v25, %v802_v24  ;;  %v804_v28 = vld [vmem:[#allocation11 + $0x10] sm:$0xff] }
  0x90   :  { %1191 = vmatmul.mubr.f32.vlgmr.msra.gmra.mrb[0].mxu1 %v113_v1  ;;  %v479_v1 = vld [vmem:[#allocation10 + $0x80] sm:$0xff] }
  0x91   :  { %1428 = vmatpush3.bf16.msra.mxu1 %v1425_v31  ;;  %v1461_v5 = vpack.c.bf16 %v480_v2, %v479_v1  ;;  %v465_v31 = vld [vmem:[#allocation10 + $0x18] sm:$0xff]  ;;  %v825_v2 = vld [vmem:[#allocation11 + $0xb0] sm:$0xff] }
  0x92   :  { %1430 = vmatprep.subr.bf16.mxu1 %v1429_v34  ;;  %v1497_v32 = vpack.c.bf16 %v465_v31, %v464_v30  ;;  %v806_v31 = vld [vmem:[#allocation11 + $0x20] sm:$0xff] }
  0x95   :  { %1432 = vmatpush3.bf16.msra.mxu1 %v1429_v34  ;;  %v467_v34 = vld [vmem:[#allocation10 + $0x28] sm:$0xff] }
  0x96   :  { %1434 = vmatprep.subr.bf16.mxu1 %v1433_v37  ;;  %v1501_v35 = vpack.c.bf16 %v467_v34, %v466_v33  ;;  %v808_v34 = vld [vmem:[#allocation11 + $0x30] sm:$0xff] }
  0x99   :  { %1436 = vmatpush3.bf16.msra.mxu1 %v1433_v37  ;;  %v469_v37 = vld [vmem:[#allocation10 + $0x38] sm:$0xff] }
  0x9a   :  { %1438 = vmatprep.subr.bf16.mxu1 %v1437_v40  ;;  %v1505_v38 = vpack.c.bf16 %v469_v37, %v468_v36  ;;  %v810_v37 = vld [vmem:[#allocation11 + $0x40] sm:$0xff] }
  0x9d   :  { %1440 = vmatpush3.bf16.msra.mxu1 %v1437_v40  ;;  %v471_v40 = vld [vmem:[#allocation10 + $0x48] sm:$0xff] }
  0x9e   :  { %1442 = vmatprep.subr.bf16.mxu1 %v1441_v43  ;;  %v1509_v41 = vpack.c.bf16 %v471_v40, %v470_v39  ;;  %v812_v40 = vld [vmem:[#allocation11 + $0x50] sm:$0xff] }
  0xa1   :  { %1444 = vmatpush3.bf16.msra.mxu1 %v1441_v43  ;;  %v473_v43 = vld [vmem:[#allocation10 + $0x58] sm:$0xff] }
  0xa2   :  { %1446 = vmatprep.subr.bf16.mxu1 %v1445_v46  ;;  %v1513_v44 = vpack.c.bf16 %v473_v43, %v472_v42  ;;  %v814_v43 = vld [vmem:[#allocation11 + $0x60] sm:$0xff] }
  0xa5   :  { %1448 = vmatpush3.bf16.msra.mxu1 %v1445_v46  ;;  %v475_v46 = vld [vmem:[#allocation10 + $0x68] sm:$0xff] }
  0xa6   :  { %1450 = vmatprep.subr.bf16.mxu1 %v1449_v49  ;;  %v1517_v47 = vpack.c.bf16 %v475_v46, %v474_v45  ;;  %v816_v46 = vld [vmem:[#allocation11 + $0x70] sm:$0xff] }
  0xa9   :  { %1452 = vmatpush3.bf16.msra.mxu1 %v1449_v49  ;;  %v477_v49 = vld [vmem:[#allocation10 + $0x78] sm:$0xff] }
  0xaa   :  { %1454 = vmatprep.subr.bf16.mxu1 %v1453_v52  ;;  %v1521_v50 = vpack.c.bf16 %v477_v49, %v476_v48  ;;  %v833_v49 = vld [vmem:[#allocation11 + $0xf0] sm:$0xff] }
  0xad   :  { %1456 = vmatpush3.bf16.msra.mxu1 %v1453_v52 }
 0x146   :  { %v1157_v53 = vpop.f32.mrb[0].mxu0 }
 0x147   :  { %v187_v54 = vpop.f32.mrb[1].mxu0 }
 0x148   :  { %1225 = vmatprep.mubr.f32.mxu1 %v187_v54  ;;  %v1771_v54 = vmov 0.0  }
 0x149   :  { %1226 = vmatmul.mubr.f32.vlgmr.msra.gmra.mrb[0].mxu1 %v1157_v53  ;;  %v1769_v53 = vmov 0.0|0.0  }
 0x14a   :  { %1525 = vmatprep.subr.bf16.mxu1 %v1769_v53  ;;  %1309 = vmatprep.mubr.msk.f32.mxu1 %vm1770_vm1, %v1771_v54 }
 0x21c   :  { %v1227_v60 = vpop.f32.mrb[0].mxu1 }
 0x21d   :  { %v384_v61 = vadd.f32 %v1227_v60, %v382_v59  ;;  %v370_v62 = vpop.f32.mrb[1].mxu1  ;;  %v821_v60 = vld [vmem:[#allocation11 + $0x90] sm:$0xff] }
 0x21e   :  { %v383_v63 = vadd.f32 %v382_v59, %v370_v62  ;;  %v1532_v59 = vpack.c.bf16 %v820_v57, %v819_v55 }
 0x21f   :  { %v386_v0 = vmax.f32 %v384_v61, 0.0  ;;  %v822_v61 = vld [vmem:[#allocation11 + $0x98] sm:$0xff] }
 0x220   :  { %v385_v3 = vmax.f32 %v383_v63, 0.0  ;;  %v1535_v62 = vpack.c.bf16 %v822_v61, %v821_v60  ;;  %v823_v63 = vld [vmem:[#allocation11 + $0xa0] sm:$0xff] }
 0x222   :  { %v1457_v4 = vpack.c.bf16 %v386_v0, %v385_v3 }
 0x224   :  { %1458 = vmatprep.subr.bf16.mxu0 %v1457_v4 }
 0x225   :  { %1460 = vmatpush3.bf16.msra.mxu0 %v1457_v4 }
 0x226   :  { %1462 = vmatprep.subr.bf16.mxu0 %v1461_v5 }
 0x228   :  { %1233 = vmatmul.mubr.msk.f32.vlgmr.msra.gmra.mrb[2].mxu0 %vm114_vm0, %v1925_v12  ;;  %v491_v12 = vld [vmem:[#allocation10 + $0xe0] sm:$0xff] }
 0x229   :  { %1464 = vmatpush3.bf16.msra.mxu0 %v1461_v5  ;;  %1267 = vmatprep.mubr.f32.mxu0 %v385_v3  ;;  %v1485_v23 = vpack.c.bf16 %v492_v22, %v491_v12  ;;  %v826_v3 = vld [vmem:[#allocation11 + $0xb8] sm:$0xff]  ;;  %v827_v5 = vld [vmem:[#allocation11 + $0xc0] sm:$0xff] }
 0x22a   :  { %1466 = vmatprep.subr.bf16.mxu0 %v1465_v8  ;;  %v1541_v4 = vpack.c.bf16 %v826_v3, %v825_v2  ;;  %v1544_v7 = vpack.c.bf16 %v828_v6, %v827_v5  ;;  %v986_v2 = vsub.s32 5, %v1930_v56 }
 0x22c   :  { %v987_v5 = vrot.slane %v1936_v58, %v986_v2 }
 0x22d   :  { %1468 = vmatpush3.bf16.msra.mxu0 %v1465_v8  ;;  %v829_v8 = vld [vmem:[#allocation11 + $0xd0] sm:$0xff] }
 0x22e   :  { %1470 = vmatprep.subr.bf16.mxu0 %v1469_v11  ;;  %v1547_v10 = vpack.c.bf16 %v830_v9, %v829_v8 }
 0x231   :  { %1472 = vmatpush3.bf16.msra.mxu0 %v1469_v11  ;;  %v831_v11 = vld [vmem:[#allocation11 + $0xe0] sm:$0xff] }
 0x232   :  { %1474 = vmatprep.subr.bf16.mxu0 %v1473_v15  ;;  %v1550_v14 = vpack.c.bf16 %v832_v13, %v831_v11  ;;  %v998_v13 = vsub.s32 3, %v1930_v56 }
 0x235   :  { %1476 = vmatpush3.bf16.msra.mxu0 %v1473_v15  ;;  %v647_v15 = vsub.s32 1, %v1930_v56 }
 0x236   :  { %1478 = vmatprep.subr.bf16.mxu0 %v1477_v18 }
 0x237   :  { %v648_v16 = vrot.slane %v1936_v58, %v647_v15  ;;  %v999_v15 = vrot.slane %v1936_v58, %v998_v13 }
 0x239   :  { %1480 = vmatpush3.bf16.msra.mxu0 %v1477_v18 }
 0x23a   :  { %1482 = vmatprep.subr.bf16.mxu0 %v1481_v21 }
 0x23d   :  { %1484 = vmatpush3.bf16.msra.mxu0 %v1481_v21 }
 0x23e   :  { %1486 = vmatprep.subr.bf16.mxu0 %v1485_v23 }
 0x241   :  { %1488 = vmatpush3.bf16.msra.mxu0 %v1485_v23  ;;  %v653_v23 = vld [vmem:[#allocation5] sm:$0xff] }
 0x242   :  { %1490 = vmatprep.subr.bf16.mxu0 %v1489_v26 }
 0x245   :  { %1492 = vmatpush3.bf16.msra.mxu0 %v1489_v26  ;;  %v728_v26 = vld [vmem:[#allocation5 + $0x8] sm:$0xff] }
 0x246   :  { %1494 = vmatprep.subr.bf16.mxu0 %v1493_v29 }
 0x248   :  { %1268 = vmatmul.mubr.f32.vlgmr.msra.gmra.mrb[4].mxu0 %v386_v0  ;;  %v824_v0 = vld [vmem:[#allocation11 + $0xa8] sm:$0xff] }
 0x249   :  { %1496 = vmatpush3.bf16.msra.mxu0 %v1493_v29  ;;  %v1538_v1 = vpack.c.bf16 %v824_v0, %v823_v63  ;;  %v805_v29 = vld [vmem:[#allocation11 + $0x18] sm:$0xff] }
 0x24a   :  { %1498 = vmatprep.subr.bf16.mxu0 %v1497_v32  ;;  %v1559_v30 = vpack.c.bf16 %v805_v29, %v804_v28 }
 0x24d   :  { %1500 = vmatpush3.bf16.msra.mxu0 %v1497_v32  ;;  %v807_v32 = vld [vmem:[#allocation11 + $0x28] sm:$0xff] }
 0x24e   :  { %1502 = vmatprep.subr.bf16.mxu0 %v1501_v35  ;;  %v1562_v33 = vpack.c.bf16 %v807_v32, %v806_v31 }
 0x251   :  { %1504 = vmatpush3.bf16.msra.mxu0 %v1501_v35  ;;  %v809_v35 = vld [vmem:[#allocation11 + $0x38] sm:$0xff] }
 0x252   :  { %1506 = vmatprep.subr.bf16.mxu0 %v1505_v38  ;;  %v1565_v36 = vpack.c.bf16 %v809_v35, %v808_v34 }
 0x255   :  { %1508 = vmatpush3.bf16.msra.mxu0 %v1505_v38  ;;  %v811_v38 = vld [vmem:[#allocation11 + $0x48] sm:$0xff] }
 0x256   :  { %1510 = vmatprep.subr.bf16.mxu0 %v1509_v41  ;;  %v1568_v39 = vpack.c.bf16 %v811_v38, %v810_v37 }
 0x259   :  { %1512 = vmatpush3.bf16.msra.mxu0 %v1509_v41  ;;  %v813_v41 = vld [vmem:[#allocation11 + $0x58] sm:$0xff] }
 0x25a   :  { %1514 = vmatprep.subr.bf16.mxu0 %v1513_v44  ;;  %v1571_v42 = vpack.c.bf16 %v813_v41, %v812_v40 }
 0x25d   :  { %1516 = vmatpush3.bf16.msra.mxu0 %v1513_v44  ;;  %v815_v44 = vld [vmem:[#allocation11 + $0x68] sm:$0xff] }
 0x25e   :  { %1518 = vmatprep.subr.bf16.mxu0 %v1517_v47  ;;  %v1574_v45 = vpack.c.bf16 %v815_v44, %v814_v43 }
 0x261   :  { %1520 = vmatpush3.bf16.msra.mxu0 %v1517_v47  ;;  %v817_v47 = vld [vmem:[#allocation11 + $0x78] sm:$0xff] }
 0x262   :  { %1522 = vmatprep.subr.bf16.mxu0 %v1521_v50  ;;  %v1577_v48 = vpack.c.bf16 %v817_v47, %v816_v46 }
 0x265   :  { %1524 = vmatpush3.bf16.msra.mxu0 %v1521_v50  ;;  %v834_v50 = vld [vmem:[#allocation11 + $0xf8] sm:$0xff] }
 0x266   :  { %1531 = vmatprep.subr.bf16.mxu0 %v1769_v53 }
 0x2fb   :  { %v1234_v51 = vpop.f32.mrb[2].mxu0 }
 0x2fc   :  { %v453_v52 = vpop.f32.mrb[3].mxu0 }
 0x2fd   :  { %1302 = vmatprep.mubr.f32.mxu0 %v453_v52 }
 0x2fe   :  { %1303 = vmatmul.mubr.f32.vlgmr.msra.gmra.mrb[4].mxu0 %v1234_v51  ;;  %v1553_v51 = vpack.c.bf16 %v834_v50, %v833_v49 }
 0x2ff   :  { %1351 = vmatprep.mubr.msk.f32.mxu0 %vm1770_vm1, %v1771_v54  ;;  %1533 = vmatpush3.bf16.msra.mxu0 %v1532_v59  ;;  %v977_v59 = vsub.s32 2, %v1930_v56 }
 0x300   :  { %1534 = vmatprep.subr.bf16.mxu0 %v1769_v53 }
 0x303   :  { %1536 = vmatpush3.bf16.msra.mxu0 %v1535_v62  ;;  %v978_v62 = vrot.slane %v1936_v58, %v977_v59 }
 0x304   :  { %1537 = vmatprep.subr.bf16.mxu0 %v1769_v53 }
 0x307   :  { %1539 = vmatpush3.bf16.msra.mxu0 %v1538_v1 }
 0x308   :  { %1540 = vmatprep.subr.bf16.mxu0 %v1769_v53 }
 0x30b   :  { %1542 = vmatpush3.bf16.msra.mxu0 %v1541_v4 }
 0x30c   :  { %1543 = vmatprep.subr.bf16.mxu0 %v1769_v53 }
 0x30f   :  { %1545 = vmatpush3.bf16.msra.mxu0 %v1544_v7 }
 0x310   :  { %1546 = vmatprep.subr.bf16.mxu0 %v1769_v53 }
 0x313   :  { %1548 = vmatpush3.bf16.msra.mxu0 %v1547_v10 }
 0x314   :  { %1549 = vmatprep.subr.bf16.mxu0 %v1769_v53 }
 0x317   :  { %1551 = vmatpush3.bf16.msra.mxu0 %v1550_v14  ;;  %v1003_v14 = vsub.s32 4, %v1930_v56 }
 0x318   :  { %1552 = vmatprep.subr.bf16.mxu0 %v1769_v53 }
 0x31b   :  { %1554 = vmatpush3.bf16.msra.mxu0 %v1553_v51 }
 0x3d1   :  { %v1304_v17 = vpop.f32.mrb[4].mxu0 }
 0x3d2   :  { %v650_v18 = vadd.f32 %v1304_v17, %v648_v16  ;;  %v636_v19 = vpop.f32.mrb[5].mxu0 }
 0x3d3   :  { %v649_v20 = vadd.f32 %v648_v16, %v636_v19 }
 0x3d4   :  { %v652_v21 = vmax.f32 %v650_v18, 0.0  ;;  %v1004_v18 = vrot.slane %v1936_v58, %v1003_v14 }
 0x3d5   :  { %v651_v12 = vmax.f32 %v649_v20, 0.0 }
 0x3d7   :  { %v1526_v22 = vpack.c.bf16 %v652_v21, %v651_v12 }
 0x3d9   :  { %1527 = vmatpush3.bf16.msra.mxu1 %v1526_v22 }
 0x3da   :  { %1528 = vmatprep.subr.bf16.mxu1 %v1769_v53 }
 0x3dc   :  { %1310 = vmatmul.mubr.msk.f32.vlgmr.msra.gmra.mrb[2].mxu1 %vm114_vm0, %v653_v23 }
 0x3dd   :  { %1530 = vmatpush3.bf16.msra.mxu1 %v1526_v22  ;;  %1316 = vmatprep.mubr.msk.f32.mxu1 %vm1770_vm1, %v1771_v54 }
 0x3de   :  { %1555 = vmatprep.subr.bf16.mxu1 %v1769_v53 }
 0x3e0   :  { %1317 = vmatmul.mubr.msk.f32.vlgmr.msra.gmra.mrb[4].mxu1 %vm114_vm0, %v728_v26 }
 0x3e1   :  { %1557 = vmatpush3.bf16.msra.mxu1 %v1556_v27  ;;  %1386 = vmatprep.mubr.msk.f32.mxu1 %vm1770_vm1, %v1771_v54 }
 0x3e2   :  { %1558 = vmatprep.subr.bf16.mxu1 %v1769_v53 }
 0x3e5   :  { %1560 = vmatpush3.bf16.msra.mxu1 %v1559_v30 }
 0x3e6   :  { %1561 = vmatprep.subr.bf16.mxu1 %v1769_v53 }
 0x3e9   :  { %1563 = vmatpush3.bf16.msra.mxu1 %v1562_v33 }
 0x3ea   :  { %1564 = vmatprep.subr.bf16.mxu1 %v1769_v53 }
 0x3ed   :  { %1566 = vmatpush3.bf16.msra.mxu1 %v1565_v36 }
 0x3ee   :  { %1567 = vmatprep.subr.bf16.mxu1 %v1769_v53 }
 0x3f1   :  { %1569 = vmatpush3.bf16.msra.mxu1 %v1568_v39 }
 0x3f2   :  { %1570 = vmatprep.subr.bf16.mxu1 %v1769_v53 }
 0x3f5   :  { %1572 = vmatpush3.bf16.msra.mxu1 %v1571_v42 }
 0x3f6   :  { %1573 = vmatprep.subr.bf16.mxu1 %v1769_v53 }
 0x3f9   :  { %1575 = vmatpush3.bf16.msra.mxu1 %v1574_v45 }
 0x3fa   :  { %1576 = vmatprep.subr.bf16.mxu1 %v1769_v53 }
 0x3fd   :  { %1578 = vmatpush3.bf16.msra.mxu1 %v1577_v48 }
 0x4af   :  { %v723_v52 = vpop.f32.mrb[2].mxu1 }
 0x4b0   :  { %v1311_v54 = vpop.f32.mrb[3].mxu1  ;;  %1387 = vmatmul.mubr.f32.vlgmr.msra.gmra.mrb[6].mxu1 %v723_v52 }
 0x4b3   :  { %v798_v55 = vpop.f32.mrb[4].mxu1 }
 0x4b4   :  { %v1318_v57 = vpop.f32.mrb[5].mxu1  ;;  %1352 = vmatmul.mubr.f32.vlgmr.msra.gmra.mrb[6].mxu0 %v798_v55 }
 0x583   :  { %v971_v60 = vpop.f32.mrb[6].mxu1 }
 0x584   :  { %v1388_v61 = vpop.f32.mrb[7].mxu1 }
 0x587   :  { %v901_v63 = vpop.f32.mrb[6].mxu0 }
 0x588   :  { %v972_v0 = vadd.f32 %v971_v60, %v901_v63  ;;  %v1353_v53 = vpop.f32.mrb[7].mxu0 }
 0x58a   :  { %v979_v1 = vadd.f32 %v978_v62, %v972_v0 }
 0x58c   :  { %980 = vadd.xlane.f32.xlu0 %v979_v1 }
 0x619   :  { %v981_v3 = vpop.xlane.xlu0 %980 }
 0x61a   :  { %v982_v4 = vmul.f32 0.0625, %v981_v3 }
 0x61c   :  { %v983_v6 = vsub.f32 %v979_v1, %v982_v4 }
 0x61e   :  { %v988_v7 = vmul.f32 %v987_v5, %v983_v6 }
 0x620   :  { %v989_v8 = vmul.f32 %v988_v7, %v988_v7 }
 0x622   :  { %990 = vadd.xlane.f32.xlu0 %v989_v8 }
 0x6af   :  { %v991_v9 = vpop.xlane.xlu0 %990 }
 0x6b0   :  { %v992_v10 = vmul.f32 0.0625, %v991_v9 }
 0x6b2   :  { %v993_v11 = vadd.f32 1e-05, %v992_v10 }
 0x6b4   :  { %1595 = vrsqrt.f32 %v993_v11 }
 0x6be   :  { %v1596_v16 = vpop.eup %1595 }
 0x6bf   :  { %v995_v17 = vmul.f32 %v1596_v16, %v988_v7 }
 0x6c1   :  { %v1000_v19 = vmul.f32 %v999_v15, %v995_v17 }
 0x6c3   :  { %v1005_v20 = vadd.f32 %v1004_v18, %v1000_v19 }
 0x6c5   :  { %1006 = vst [vmem:[#allocation13] sm:$0xff] %v1005_v20 }
 0x6c6   :  { %1740 = shalt.err (!%p1737_p10)
}
 0x6c7   :  { %s1741_s28 = scalar_lea.hbm %s1998_s7, 128 }
 0x6c8   :  { %p1742_p11 = scmp.ne.s32.totalorder %s1998_s7, %s1741_s28  ;;  %p1745_p12 = scmp.lt.u32.totalorder %s1741_s28, %s1998_s7 }
 0x6ca   :  { %p1747_p13 = pnand %p1745_p12, %p1742_p11 }
 0x6cc   :  { %1750 = shalt.err (!%p1747_p13)
}
 0x6cd   :  { %1016 = dma.vmem_to_hbm [thread:$0]  %s1014_s14, 128, %s1998_s7, [#allocation4]  }
 0x6ce   :  { %1759 = dma.done.wait [#allocation4], 128  }
 0x6cf   :  { %1760 = vsyncadd [#allocation4], 4294967168 }
 0x6d0   :  { %1020 = vsyncpa [#allocation3], 1 }
 0x6d1   :  { %1021 = vsyncpa [#allocation6], 1 }
 0x6d2   :  { %1022 = vsyncpa [#allocation9], 1 }
 0x6d3   :  { %1023 = vsyncpa [#allocation12], 1 }
 0x6d4   :  { %1024 = vsyncpa [#allocation4], 1 }

</bundles_post_ra>
